<compile_context>
chip_gen: v5e
topology: v5e:2x2
jax: 0.10.0
libtpu: 0.0.40
codegen_flags: <defaults>
</compile_context>

<pallas_src>
import functools

import jax
import jax.numpy as jnp
from jax import lax
from jax.experimental import pallas as pl
from jax.experimental.pallas import tpu as pltpu


def _round_up(x, m):
    return ((x + m - 1) // m) * m


def _cdiv(a, b):
    return -(-a // b)


def _angular_loss_kernel(feat_ref, lab_ref, mc_ref, out_ref, *, b_total, tile_b, t_len):
    """One B-tile: fused temporal mean, proto matmul, row-wise cosine, masked partial sum."""
    eps = 1e-12
    i = pl.program_id(0)

    if t_len is None:
        # 2-D features path: dense (TB, D) block, single widen.
        fmean = feat_ref[...].astype(jnp.float32)                          # (TB, D)
    else:
        # Fused temporal mean: widen each (TB, D) T-slice into an f32 accumulator so the
        # full (TB, T, D) block is never materialized in f32 (matters for bf16 inputs).
        fmean = feat_ref[:, 0, :].astype(jnp.float32)
        for t in range(1, t_len):                                          # T is small & static
            fmean = fmean + feat_ref[:, t, :].astype(jnp.float32)
        fmean = fmean * jnp.float32(1.0 / t_len)                           # (TB, D)

    # proto_y = labels @ mean_class.  Operands stay in their source dtype (bf16 fed natively
    # to the MXU), accumulation in f32.
    # TODO(synk): for strictly one-hot labels with large C, a scalar-prefetch row gather of
    # mean_class would remove the (B, C) HBM stream and the K=C matmul entirely.
    proto = jnp.dot(lab_ref[...], mc_ref[...],
                    preferred_element_type=jnp.float32)                    # (TB, D)

    # Row-wise cosine via rsqrt rescale:
    #   rsqrt(max(||x||^2, eps^2)) == 1 / max(||x||, eps)  (matches F.normalize's clamp).
    dot = jnp.sum(fmean * proto, axis=1, keepdims=True)                    # (TB, 1)
    f_sq = jnp.sum(fmean * fmean, axis=1, keepdims=True)                   # (TB, 1)
    p_sq = jnp.sum(proto * proto, axis=1, keepdims=True)                   # (TB, 1)
    inv_f = lax.rsqrt(jnp.maximum(f_sq, eps * eps))
    inv_p = lax.rsqrt(jnp.maximum(p_sq, eps * eps))
    cos = dot * inv_f * inv_p                                              # (TB, 1)

    # Ragged last tile: rows past the true batch size hold stale VMEM garbage.  Mask with a
    # select (NOT a multiply) so NaN/Inf in invalid rows cannot propagate into the sum.
    row = i * tile_b + lax.broadcasted_iota(jnp.int32, (tile_b, 1), 0)
    valid = row < b_total
    partial = jnp.sum(jnp.where(valid, 1.0 - cos, 0.0))                    # scalar partial sum

    # Lane-dense (8, 128) per-tile output slab (unmasked stores).
    out_ref[...] = jnp.broadcast_to(partial, out_ref.shape).astype(jnp.float32)


def _vmem_budget():
    """(vmem_limit_bytes, double-buffered block budget) for the local TPU generation."""
    try:
        cap = int(getattr(pltpu.get_tpu_info(), "vmem_capacity_bytes", 64 << 20))
    except Exception:
        cap = 64 << 20                       # conservative fallback (v7x per-core VMEM)
    vmem_limit = min(cap * 3 // 4, 100 << 20)   # ~96 MiB on v5e/v6e, ~48 MiB on v7x
    block_budget = vmem_limit * 3 // 5          # headroom for output buffers + f32 temps
    return vmem_limit, block_budget


def _pick_tile(b, t, d, c, feat_bytes, lab_bytes, mc_bytes, *, tb_max, budget_bytes):
    """Largest multiple-of-8 B-tile whose double-buffered VMEM blocks fit the budget.

    Uses the *padded* VMEM footprint (T sublane-padded to 8, D/C lane-padded to 128) and
    caps the tile so there are >= 2 grid tiles when B >= 16 (keeps both v7x TCs busy).
    """
    t_eff = 1 if t is None else _round_up(t, 8)
    d_pad = _round_up(d, 128)
    c_pad = _round_up(c, 128)

    def vmem_bytes(tb):
        feat = 2 * tb * t_eff * d_pad * feat_bytes          # double-buffered features block
        lab = 2 * tb * c_pad * lab_bytes                     # double-buffered labels block
        mc = 2 * _round_up(c, 8) * d_pad * mc_bytes          # resident prototypes
        temps = 2 * tb * d_pad * 4                           # f32 fmean + proto live values
        return feat + lab + mc + temps

    tb = max(8, min(_round_up(tb_max, 8), _round_up(b, 8)))
    if b >= 16:                                              # guarantee >= 2 tiles
        tb = min(tb, _round_up(_cdiv(b, 2), 8))
    while tb > 8 and vmem_bytes(tb) > budget_bytes:
        tb = max(8, ((tb // 2) // 8) * 8)
    return tb


def predefined_prototypes_angular_loss(features, labels, mean_class, *, tile_b=512):
    """JAX wrapper. `features` may be (B, T, D) or (B, D). No dtype upcast / pad copy in HBM."""
    if features.ndim == 3:
        B, T, D = features.shape
        t_len = T
    elif features.ndim == 2:
        B, D = features.shape
        t_len = None
    else:
        raise ValueError("features must be (B, T, D) or (B, D)")
    C = labels.shape[-1]

    feat_bytes = jnp.dtype(features.dtype).itemsize
    lab_bytes = jnp.dtype(labels.dtype).itemsize
    mc_bytes = jnp.dtype(mean_class.dtype).itemsize

    vmem_limit, block_budget = _vmem_budget()
    tb = _pick_tile(B, t_len, D, C, feat_bytes, lab_bytes, mc_bytes,
                    tb_max=tile_b, budget_bytes=block_budget)
    # Ragged last tile handled in-kernel (no jnp.pad / extra HBM round trip).
    num_tiles = _cdiv(B, tb)

    if t_len is None:
        feat_spec = pl.BlockSpec((tb, D), lambda i: (i, 0))
    else:
        feat_spec = pl.BlockSpec((tb, t_len, D), lambda i: (i, 0, 0))

    kernel = functools.partial(_angular_loss_kernel, b_total=B, tile_b=tb, t_len=t_len)

    t_count = 1 if t_len is None else t_len
    cost = pl.CostEstimate(
        flops=2 * B * C * D + B * t_count * D + 8 * B * D,
        transcendentals=2 * B,
        bytes_accessed=(B * t_count * D * feat_bytes
                        + B * C * lab_bytes
                        + C * D * mc_bytes
                        + num_tiles * 8 * 128 * 4),
    )

    partials = pl.pallas_call(
        kernel,
        out_shape=jax.ShapeDtypeStruct((num_tiles, 8, 128), jnp.float32),
        grid=(num_tiles,),
        in_specs=[
            feat_spec,                                   # features tile (streamed)
            pl.BlockSpec((tb, C), lambda i: (i, 0)),     # labels tile (streamed)
            pl.BlockSpec((C, D), lambda i: (0, 0)),      # prototypes (resident)
        ],
        out_specs=pl.BlockSpec((1, 8, 128), lambda i: (i, 0, 0)),
        compiler_params=pltpu.CompilerParams(
            dimension_semantics=("parallel",),
            vmem_limit_bytes=vmem_limit,
        ),
        cost_estimate=cost,
    )(features, labels, mean_class)

    # Tiny finalize in XLA: sum of per-tile partial sums / true batch size.
    return jnp.sum(partials[:, 0, 0]) / jnp.float32(B)


def make_mean_class(key, n_classes, embed_dim):
    """Deterministic stand-in for scipy ortho_group init: rows of an orthogonal matrix."""
    # Here embed_dim >= n_classes, so take the first n_classes rows of a D x D orthogonal matrix.
    # TODO(synk): jl_transform branch (embed_dim < n_classes) not implemented.
    a = jax.random.normal(key, (embed_dim, embed_dim), dtype=jnp.float32)
    q, _ = jnp.linalg.qr(a)
    return q[:n_classes]


def _reference(features, labels, mean_class):
    features = features.astype(jnp.float32)
    labels = labels.astype(jnp.float32)
    mean_class = mean_class.astype(jnp.float32)
    if features.ndim == 3:
        features = jnp.mean(features, axis=1)
    proto = labels @ mean_class
    f = features / jnp.maximum(jnp.linalg.norm(features, axis=1, keepdims=True), 1e-12)
    p = proto / jnp.maximum(jnp.linalg.norm(proto, axis=1, keepdims=True), 1e-12)
    return jnp.mean(1.0 - jnp.sum(f * p, axis=1))


if __name__ == "__main__":
    B, T, C, D = 10, 6, 4, 32  # batch, seq, n_classes, embed_dim (B not a multiple of 8)

    key = jax.random.PRNGKey(0)
    k_proto, k_feat, k_lab = jax.random.split(key, 3)

    mean_class = make_mean_class(k_proto, C, D)                          # (C, D) f32
    features = jax.random.normal(k_feat, (B, T, D), dtype=jnp.float32)   # (B, T, D)
    label_ids = jax.random.randint(k_lab, (B,), 0, C)
    labels = jax.nn.one_hot(label_ids, C, dtype=jnp.float32)             # (B, C)

    # 3-D path, small forced tile -> 2 grid tiles with a ragged (masked) last tile, no pad copy.
    loss = predefined_prototypes_angular_loss(features, labels, mean_class, tile_b=8)
    loss = jax.block_until_ready(loss)
    ref = _reference(features, labels, mean_class)
    assert jnp.allclose(loss, ref, atol=1e-5, rtol=1e-5), (loss, ref)

    # 2-D features path (dense (B, D) blocks, no sublane-padded T axis), default tile size.
    feats2d = jnp.mean(features, axis=1)
    loss2 = predefined_prototypes_angular_loss(feats2d, labels, mean_class)
    loss2 = jax.block_until_ready(loss2)
    ref2 = _reference(feats2d, labels, mean_class)
    assert jnp.allclose(loss2, ref2, atol=1e-5, rtol=1e-5), (loss2, ref2)

    # bf16 streams: fed natively to the MXU / widened per-slice inside the kernel (f32 acc).
    feats_bf16 = features.astype(jnp.bfloat16)
    labels_bf16 = labels.astype(jnp.bfloat16)
    mc_bf16 = mean_class.astype(jnp.bfloat16)
    loss3 = predefined_prototypes_angular_loss(feats_bf16, labels_bf16, mc_bf16, tile_b=8)
    loss3 = jax.block_until_ready(loss3)
    ref3 = _reference(feats_bf16, labels_bf16, mc_bf16)
    assert jnp.allclose(loss3, ref3, atol=2e-3, rtol=2e-3), (loss3, ref3)

    print("KERNEL_OK")
</pallas_src>

<mosaic_0001>
module attributes {stable_mosaic.version = 11 : i64} {
  func.func @_angular_loss_kernel(%arg0: i32, %arg1: memref<8x6x32xf32, #tpu.memory_space<vmem>>, %arg2: memref<8x4xf32, #tpu.memory_space<vmem>>, %arg3: memref<4x32xf32, #tpu.memory_space<vmem>>, %arg4: memref<1x8x128xf32, #tpu.memory_space<vmem>>) attributes {dimension_semantics = [#tpu.dimension_semantics<parallel>], iteration_bounds = array<i64: 2>, scalar_prefetch = 0 : i64, scratch_operands = 0 : i64, tpu.core_type = #tpu.core_type<tc>, window_params = [{transform_indices = @transform_0, window_bounds = array<i64: 8, 6, 32>}, {transform_indices = @transform_1, window_bounds = array<i64: 8, 4>}, {pipeline_mode = #tpu.pipeline_mode<synchronous>, transform_indices = @transform_2, window_bounds = array<i64: 4, 32>}, {transform_indices = @transform_3, window_bounds = array<i64: 1, 8, 128>}]} {
    %c0 = arith.constant 0 : index
    %c0_0 = arith.constant 0 : index
    %c0_1 = arith.constant 0 : index
    %0 = vector.load %arg1[%c0, %c0_0, %c0_1] : memref<8x6x32xf32, #tpu.memory_space<vmem>>, vector<8x1x32xf32>
    %1 = vector.shape_cast %0 : vector<8x1x32xf32> to vector<8x32xf32>
    %c0_2 = arith.constant 0 : index
    %c1 = arith.constant 1 : index
    %c0_3 = arith.constant 0 : index
    %2 = vector.load %arg1[%c0_2, %c1, %c0_3] : memref<8x6x32xf32, #tpu.memory_space<vmem>>, vector<8x1x32xf32>
    %3 = vector.shape_cast %2 : vector<8x1x32xf32> to vector<8x32xf32>
    %4 = arith.addf %1, %3 : vector<8x32xf32>
    %c0_4 = arith.constant 0 : index
    %c2 = arith.constant 2 : index
    %c0_5 = arith.constant 0 : index
    %5 = vector.load %arg1[%c0_4, %c2, %c0_5] : memref<8x6x32xf32, #tpu.memory_space<vmem>>, vector<8x1x32xf32>
    %6 = vector.shape_cast %5 : vector<8x1x32xf32> to vector<8x32xf32>
    %7 = arith.addf %4, %6 : vector<8x32xf32>
    %c0_6 = arith.constant 0 : index
    %c3 = arith.constant 3 : index
    %c0_7 = arith.constant 0 : index
    %8 = vector.load %arg1[%c0_6, %c3, %c0_7] : memref<8x6x32xf32, #tpu.memory_space<vmem>>, vector<8x1x32xf32>
    %9 = vector.shape_cast %8 : vector<8x1x32xf32> to vector<8x32xf32>
    %10 = arith.addf %7, %9 : vector<8x32xf32>
    %c0_8 = arith.constant 0 : index
    %c4 = arith.constant 4 : index
    %c0_9 = arith.constant 0 : index
    %11 = vector.load %arg1[%c0_8, %c4, %c0_9] : memref<8x6x32xf32, #tpu.memory_space<vmem>>, vector<8x1x32xf32>
    %12 = vector.shape_cast %11 : vector<8x1x32xf32> to vector<8x32xf32>
    %13 = arith.addf %10, %12 : vector<8x32xf32>
    %c0_10 = arith.constant 0 : index
    %c5 = arith.constant 5 : index
    %c0_11 = arith.constant 0 : index
    %14 = vector.load %arg1[%c0_10, %c5, %c0_11] : memref<8x6x32xf32, #tpu.memory_space<vmem>>, vector<8x1x32xf32>
    %15 = vector.shape_cast %14 : vector<8x1x32xf32> to vector<8x32xf32>
    %16 = arith.addf %13, %15 : vector<8x32xf32>
    %cst = arith.constant 0.166666672 : f32
    %17 = vector.broadcast %cst : f32 to vector<8x32xf32>
    %18 = arith.mulf %16, %17 : vector<8x32xf32>
    %c0_12 = arith.constant 0 : index
    %c0_13 = arith.constant 0 : index
    %19 = vector.load %arg2[%c0_12, %c0_13] : memref<8x4xf32, #tpu.memory_space<vmem>>, vector<8x4xf32>
    %c0_14 = arith.constant 0 : index
    %c0_15 = arith.constant 0 : index
    %20 = vector.load %arg3[%c0_14, %c0_15] : memref<4x32xf32, #tpu.memory_space<vmem>>, vector<4x32xf32>
    %cst_16 = arith.constant dense<0.000000e+00> : vector<8x32xf32>
    %21 = tpu.matmul %19, %20, %cst_16 {dimension_numbers = #tpu.dot_dimension_numbers<[1], [0], [0], [1], [0, 0, 1, 1], [], []>} : vector<8x4xf32>, vector<4x32xf32>, vector<8x32xf32> -> vector<8x32xf32>
    %22 = arith.mulf %18, %21 : vector<8x32xf32>
    %cst_17 = arith.constant dense<0.000000e+00> : vector<8xf32>
    %23 = vector.multi_reduction <add>, %22, %cst_17 [1] : vector<8x32xf32> to vector<8xf32>
    %24 = vector.shape_cast %23 : vector<8xf32> to vector<8x1xf32>
    %25 = arith.mulf %18, %18 : vector<8x32xf32>
    %cst_18 = arith.constant dense<0.000000e+00> : vector<8xf32>
    %26 = vector.multi_reduction <add>, %25, %cst_18 [1] : vector<8x32xf32> to vector<8xf32>
    %27 = vector.shape_cast %26 : vector<8xf32> to vector<8x1xf32>
    %28 = arith.mulf %21, %21 : vector<8x32xf32>
    %cst_19 = arith.constant dense<0.000000e+00> : vector<8xf32>
    %29 = vector.multi_reduction <add>, %28, %cst_19 [1] : vector<8x32xf32> to vector<8xf32>
    %30 = vector.shape_cast %29 : vector<8xf32> to vector<8x1xf32>
    %cst_20 = arith.constant 1.000000e-24 : f32
    %31 = vector.broadcast %cst_20 : f32 to vector<8x1xf32>
    %32 = arith.maximumf %27, %31 : vector<8x1xf32>
    %33 = math.rsqrt %32 : vector<8x1xf32>
    %cst_21 = arith.constant 1.000000e-24 : f32
    %34 = vector.broadcast %cst_21 : f32 to vector<8x1xf32>
    %35 = arith.maximumf %30, %34 : vector<8x1xf32>
    %36 = math.rsqrt %35 : vector<8x1xf32>
    %37 = arith.mulf %24, %33 : vector<8x1xf32>
    %38 = arith.mulf %37, %36 : vector<8x1xf32>
    %c8_i32 = arith.constant 8 : i32
    %39 = arith.muli %arg0, %c8_i32 : i32
    %40 = tpu.iota {dimensions = array<i32: 0>} : vector<8x1xi32>
    %41 = vector.broadcast %39 : i32 to vector<8x1xi32>
    %42 = arith.addi %41, %40 : vector<8x1xi32>
    %c10_i32 = arith.constant 10 : i32
    %43 = vector.broadcast %c10_i32 : i32 to vector<8x1xi32>
    %44 = arith.cmpi slt, %42, %43 : vector<8x1xi32>
    %cst_22 = arith.constant 1.000000e+00 : f32
    %45 = vector.broadcast %cst_22 : f32 to vector<8x1xf32>
    %46 = arith.subf %45, %38 : vector<8x1xf32>
    %cst_23 = arith.constant 0.000000e+00 : f32
    %47 = vector.broadcast %cst_23 : f32 to vector<8x1xf32>
    %48 = arith.select %44, %46, %47 : vector<8x1xi1>, vector<8x1xf32>
    %49 = vector.shape_cast %48 : vector<8x1xf32> to vector<1x8x1xf32>
    %cst_24 = arith.constant dense<0.000000e+00> : vector<1xf32>
    %50 = vector.multi_reduction <add>, %49, %cst_24 [1, 2] : vector<1x8x1xf32> to vector<1xf32>
    %51 = vector.shape_cast %50 : vector<1xf32> to vector<1x1x1xf32>
    %52 = vector.extract %51[0, 0, 0] : f32 from vector<1x1x1xf32>
    %53 = vector.broadcast %52 : f32 to vector<1x8x128xf32>
    %c0_25 = arith.constant 0 : index
    %c0_26 = arith.constant 0 : index
    %c0_27 = arith.constant 0 : index
    %54 = vector.load %arg4[%c0_25, %c0_26, %c0_27] : memref<1x8x128xf32, #tpu.memory_space<vmem>>, vector<1x8x128xf32>
    tpu.vector_store %arg4[%c0_25, %c0_26, %c0_27], %53 {strides = array<i32>} : memref<1x8x128xf32, #tpu.memory_space<vmem>>, vector<1x8x128xf32>,
    return
  }
  func.func @transform_0(%arg0: i32) -> (i32, i32, i32) {
    %c0_i32 = arith.constant 0 : i32
    %c0_i32_0 = arith.constant 0 : i32
    %c0_i32_1 = arith.constant 0 : i32
    return %arg0, %c0_i32, %c0_i32_0 : i32, i32, i32
  }
  func.func @transform_1(%arg0: i32) -> (i32, i32) {
    %c0_i32 = arith.constant 0 : i32
    %c0_i32_0 = arith.constant 0 : i32
    return %arg0, %c0_i32 : i32, i32
  }
  func.func @transform_2(%arg0: i32) -> (i32, i32) {
    %c0_i32 = arith.constant 0 : i32
    %c0_i32_0 = arith.constant 0 : i32
    %c0_i32_1 = arith.constant 0 : i32
    return %c0_i32, %c0_i32_0 : i32, i32
  }
  func.func @transform_3(%arg0: i32) -> (i32, i32, i32) {
    %c0_i32 = arith.constant 0 : i32
    %c0_i32_0 = arith.constant 0 : i32
    %c0_i32_1 = arith.constant 0 : i32
    return %arg0, %c0_i32, %c0_i32_0 : i32, i32, i32
  }
}

</mosaic_0001>

<bundles_post_ra>
// kernel: tpu_custom_call.1
= control target key start
LH: loop header
LB: loop body
LE: loop exit
PB: predicated region body
PF: predicated region fallthrough
CT: control target
= control target key end

     0   :  { %8 = vsyncpa [#allocation3], 0  ;;  %s1009_s0 = inlined_call_operand.hbm [shape: f32[10,6,32], index: 0, kind: input, shape index: {}]   ;;  %s1010_s1 = inlined_call_operand.vmem [shape: f32[10,4], index: 1, kind: input, shape index: {}]   ;;  %s1011_s2 = inlined_call_operand.vmem [shape: f32[4,32], index: 2, kind: input, shape index: {}]   ;;  %s1012_s3 = inlined_call_operand.hbm [shape: f32[2,8,128], index: 3, kind: output, shape index: {}]  }
   0x1   :  { %10 = vsyncpa [#allocation3 + $0x1], 0 }
   0x2   :  { %11 = vsyncpa [#allocation4], 0 }
   0x3   :  { %13 = vsyncpa [#allocation4 + $0x1], 0  ;;  %s785_s12 = smov 0   ;;  %s787_s13 = smov 0  }
   0x4   :  { %s789_s14 = smov 0   ;;  %s791_s15 = smov 0  }
   0x5 LB: > { %s806_s16 = sadd.s32 4294967295, %s760_s15   ;;  %s585_s17 = sadd.s32 4294967294, %s760_s15   ;;  %s760_s15 = sphi %s791_s15, %s1022_s15   ;;  %s756_s14 = sphi %s789_s14, %s1021_s14   ;;  %s752_s13 = sphi %s787_s13, %s1020_s13   ;;  %s748_s12 = sphi %s785_s12, %s1019_s12  }
   0x6   : > { %s810_s18 = sadd.s32 1, %s760_s15   ;;  %s26_s19 = sadd.s32 1, %s756_s14 }
   0x7   : > { %s23_s20 = ssub.s32 %s760_s15, %s810_s18  ;;  %p33_p0 = scmp.ne.s32.totalorder %s756_s14, %s752_s13 }
   0x8   : > { %p24_p1 = scmp.eq.s32.totalorder %s23_s20, 0  ;;  %p34_p2 = scmp.eq.s32.totalorder %s760_s15, 0 }
   0x9   : > { %p39_p3 = scmp.ne.s32.totalorder %s752_s13, %s748_s12  ;;  %p40_p4 = scmp.eq.s32.totalorder %s806_s16, 0 }
   0xa   : > { %s822_s21 = scalar_select %p24_p1, %s756_s14, %s26_s19  }
   0xb   : > { %p35_p5 = por %p34_p2, %p33_p0  ;;  %p824_p6 = por %p40_p4, %p39_p3 }
   0xc   : > { %p110_p7 = scmp.eq.s32.totalorder %s806_s16, 1  ;;  %p116_p8 = scmp.eq.s32.totalorder %s585_s17, 1 }
   0xd   : > { %p1013_p11 = scmp.ge.s32.totalorder %s760_s15, 2 }
   0xe   : > { %p829_p9 = por %p110_p7, %p33_p0  ;;  %p833_p10 = por %p116_p8, %p39_p3 }
   0xf   : > { %135 = sbr.rel (%p1013_p11) target bundleno = 56 (0x38), region = 20 }
  0x14   : > { %138 = sbr.rel (!%p35_p5) target bundleno = 56 (0x38), region = 24  ;;  %s139_s25 = sand.u32 (%p35_p5), 1, %s756_s14  }
  0x15   : > { %s589_s26 = sshll.u32 (%p35_p5), %s760_s15, 3  ;;  %s588_s27 = sshll.u32 (%p35_p5), %s139_s25, 6 }
  0x16   : > { %s145_s28 = ssub.s32 (%p35_p5), 10, %s589_s26  ;;  %s845_s5 = scalar_lea.sflag (%p35_p5), [#allocation3], %s139_s25 }
  0x17   : > { %p146_p12 = scmp.lt.s32.totalorder (%p35_p5), %s145_s28, 8  ;;  %s143_s6 = scalar_lea.vmem (%p35_p5), [#allocation2], %s588_s27 }
  0x19   : > { %s1024_s28 = smov (!%p146_p12, %s145_s28), 8 }
  0x1a   : > { %s590_s29 = sshll.u32 %s1024_s28, 3 }
  0x1b   : > { %s149_s30 = ssub.s32 64, %s590_s29 }
  0x1c   : > { %s150_s4 = sshll.u32 %s149_s30, 4 }
  0x1d   : > { %151 = vsyncadd %s845_s5, %s150_s4  ;;  %p848_p13 = scmp.ne.s32.totalorder %s590_s29, 0  ;;  %s606_s8 = sshll.u32 %s760_s15, 6 }
  0x1e   : > { %s154_s11 = scalar_lea.hbm %s1009_s0, %s606_s8  ;;  %s856_s17 = sshll.u32 %s143_s6, 4  ;;  %s159_s17 = int_to_ptr.vmem [resolvable:$true] %s856_s17 }
  0x1f   : > { %s156_s19 = sshll.u32 %s154_s11, 4  ;;  %s594_s20 = sshll.u32 %s1024_s28, 7  ;;  %s859_s19 = int_to_ptr.hbm [resolvable:$true] %s156_s19 }
  0x20   : > { %s655_s25 = sshra.s32 %s859_s19, 4  ;;  %s657_s26 = sshrl.u32 %s594_s20, 4  ;;  %s656_s25 = int_to_ptr.hbm [resolvable:$true] %s655_s25 }
  0x21   : > { %s662_s27 = scalar_lea.hbm %s656_s25, %s657_s26  ;;  %s666_s4 = scalar_lea.hbm %s1009_s0, 80 }
  0x22   : > { %p663_p0 = scmp.ne.s32.totalorder %s656_s25, %s662_s27  ;;  %p667_p3 = scmp.lt.s32.totalorder %s656_s25, %s1009_s0 }
  0x23   : > { %p668_p4 = scmp.lt.s32.totalorder %s666_s4, %s662_s27 }
  0x24   : > { %p664_p1 = pnand %p663_p0, %p848_p13 }
  0x25   : > { %p669_p5 = por %p668_p4, %p667_p3 }
  0x26   : > { %p665_p2 = pneg %p664_p1 }
  0x28   : > { %p670_p7 = pnand %p669_p5, %p665_p2 }
  0x2a   : > { %673 = shalt.err (!%p670_p7)
}
  0x2b   : > { %s674_s9 = sshra.s32 %s159_s17, 4  ;;  %s762_s11 = smov [#allocation2]   ;;  %s675_s9 = int_to_ptr.vmem [resolvable:$true] %s674_s9 }
  0x2c   : > { %s681_s10 = scalar_lea.vmem %s675_s9, %s657_s26  ;;  %s685_s29 = scalar_lea.vmem %s762_s11, 128 }
  0x2d   : > { %p682_p8 = scmp.ne.s32.totalorder %s675_s9, %s681_s10  ;;  %p687_p1 = scmp.lt.s32.totalorder %s685_s29, %s681_s10 }
  0x2f   : > { %p683_p12 = pnand %p682_p8, %p848_p13 }
  0x31   : > { %p684_p0 = pneg %p683_p12 }
  0x33   : > { %p689_p11 = pnand %p687_p1, %p684_p0 }
  0x35   : > { %692 = shalt.err (!%p689_p11)
}
  0x36   : > { %s763_s25 = smov 128   ;;  %s764_s27 = smov 8  }
  0x37   : > { %164 = dma.hbm_to_vmem [thread:$0]  (%p848_p13), %s859_s19, %s594_s20, %s159_s17, %s845_s5, %s763_s25, %s763_s25, %s764_s27  }
  0x38 PF: > { %p595_p2 = scmp.ge.s32.totalorder %s760_s15, 1  ;;  %p173_p3 = scmp.lt.s32.totalorder %s760_s15, 3 }
  0x3a   : > { %p174_p4 = pnand %p595_p2, %p173_p3 }
  0x3b   : > { %s888_s26 = sand.u32 (!%p174_p4), 1, %s752_s13  }
  0x3c   : > { %177 = sbr.rel (%p174_p4) target bundleno = 526 (0x20e), region = 32  ;;  %s596_s30 = sshll.u32 (!%p174_p4), %s888_s26, 6 }
  0x3d   : > { %s180_s4 = scalar_lea.sflag (!%p174_p4), [#allocation3], %s888_s26  ;;  %s892_s7 = scalar_lea.vmem (!%p174_p4), [#allocation2], %s596_s30 }
  0x41   : > { %739 = dma.done.wait (%p824_p6), %s180_s4, 1024  }
  0x42   : > { %741 = vsyncadd (%p824_p6), %s180_s4, 4294966272  ;;  %p216_p11 = scmp.lt.s32.totalorder %s806_s16, 1  ;;  %vm322_vm0 = vcmask 1043456   ;;  %vm318_vm1 = vcmask 31744   ;;  %v317_v0 = vld [vmem:[%s1011_s2] sm:$0xf] }
  0x43   : > { %v220_v2 = vld [vmem:[%s892_s7] sm:$0x1]  ;;  %599 = vmatpush.msk.msra.mxu0 %vm322_vm0, %v317_v0  ;;  %v221_v3 = vld [vmem:[%s892_s7 + $0x8] sm:$0x1]  ;;  %v222_v4 = vld [vmem:[%s892_s7 + $0x10] sm:$0x1] }
  0x44   : > { %s217_s28 = scalar_select %p216_p11, %s806_s16, 1  ;;  %v223_v5 = vld [vmem:[%s892_s7 + $0x18] sm:$0x1]  ;;  %v224_v6 = vld [vmem:[%s892_s7 + $0x20] sm:$0x1]  ;;  %vm379_vm2 = vcmask 1041409  }
  0x45   : > { %v225_v7 = vld [vmem:[%s892_s7 + $0x28] sm:$0x1]  ;;  %v226_v8 = vld [vmem:[%s892_s7 + $0x30] sm:$0x1]  ;;  %v227_v9 = vld [vmem:[%s892_s7 + $0x38] sm:$0x1] }
  0x46   : > { %s598_s5 = sshll.u32 %s217_s28, 3  ;;  %v228_v10 = vld [vmem:[%s892_s7 + $0x1] sm:$0x1]  ;;  %v229_v11 = vld [vmem:[%s892_s7 + $0x9] sm:$0x1]  ;;  %vm382_vm3 = vcmask 1042434  }
  0x47   : > { %s219_s22 = scalar_lea.vmem %s1010_s1, %s598_s5  ;;  %v230_v12 = vld [vmem:[%s892_s7 + $0x11] sm:$0x1]  ;;  %v231_v13 = vld [vmem:[%s892_s7 + $0x19] sm:$0x1]  ;;  %v232_v14 = vld [vmem:[%s892_s7 + $0x21] sm:$0x1]  ;;  %v236_v15 = vadd.f32 %v228_v10, %v220_v2  ;;  %v237_v16 = vadd.f32 %v229_v11, %v221_v3 }
  0x48   : > { %v316_v1 = vld [vmem:[%s219_s22] sm:$0xff]  ;;  %v233_v17 = vld [vmem:[%s892_s7 + $0x29] sm:$0x1]  ;;  %v234_v18 = vld [vmem:[%s892_s7 + $0x31] sm:$0x1]  ;;  %v238_v20 = vadd.f32 %v230_v12, %v222_v4  ;;  %v239_v21 = vadd.f32 %v231_v13, %v223_v5  ;;  %v240_v22 = vadd.f32 %v232_v14, %v224_v6  ;;  %vm385_vm4 = vcmask 1043459  }
  0x49   : > { %600 = vmatmul.msk.f32.vlgmr.msra.gmra.mxu0 %vm318_vm1, %v316_v1  ;;  %v235_v19 = vld [vmem:[%s892_s7 + $0x39] sm:$0x1]  ;;  %v241_v23 = vadd.f32 %v233_v17, %v225_v7  ;;  %v242_v24 = vadd.f32 %v234_v18, %v226_v8  ;;  %v244_v26 = vld [vmem:[%s892_s7 + $0x2] sm:$0x1]  ;;  %v245_v27 = vld [vmem:[%s892_s7 + $0xa] sm:$0x1] }
  0x4a   : > { %v243_v25 = vadd.f32 %v235_v19, %v227_v9  ;;  %v246_v28 = vld [vmem:[%s892_s7 + $0x12] sm:$0x1]  ;;  %v247_v29 = vld [vmem:[%s892_s7 + $0x1a] sm:$0x1]  ;;  %v248_v30 = vld [vmem:[%s892_s7 + $0x22] sm:$0x1]  ;;  %v252_v32 = vadd.f32 %v244_v26, %v236_v15  ;;  %v253_v33 = vadd.f32 %v245_v27, %v237_v16 }
  0x4b   : > { %v249_v31 = vld [vmem:[%s892_s7 + $0x2a] sm:$0x1]  ;;  %v254_v34 = vadd.f32 %v246_v28, %v238_v20  ;;  %v250_v35 = vld [vmem:[%s892_s7 + $0x32] sm:$0x1]  ;;  %v251_v36 = vld [vmem:[%s892_s7 + $0x3a] sm:$0x1]  ;;  %v255_v37 = vadd.f32 %v247_v29, %v239_v21  ;;  %v256_v38 = vadd.f32 %v248_v30, %v240_v22 }
  0x4c   : > { %v257_v39 = vadd.f32 %v249_v31, %v241_v23  ;;  %v260_v40 = vld [vmem:[%s892_s7 + $0x3] sm:$0x1]  ;;  %v258_v41 = vadd.f32 %v250_v35, %v242_v24  ;;  %v259_v42 = vadd.f32 %v251_v36, %v243_v25  ;;  %v261_v43 = vld [vmem:[%s892_s7 + $0xb] sm:$0x1]  ;;  %v262_v44 = vld [vmem:[%s892_s7 + $0x13] sm:$0x1] }
  0x4d   : > { %v263_v45 = vld [vmem:[%s892_s7 + $0x1b] sm:$0x1]  ;;  %v268_v46 = vadd.f32 %v260_v40, %v252_v32  ;;  %v264_v47 = vld [vmem:[%s892_s7 + $0x23] sm:$0x1]  ;;  %v265_v48 = vld [vmem:[%s892_s7 + $0x2b] sm:$0x1]  ;;  %v269_v50 = vadd.f32 %v261_v43, %v253_v33  ;;  %v270_v51 = vadd.f32 %v262_v44, %v254_v34 }
  0x4e   : > { %v266_v49 = vld [vmem:[%s892_s7 + $0x33] sm:$0x1]  ;;  %v271_v52 = vadd.f32 %v263_v45, %v255_v37  ;;  %v267_v53 = vld [vmem:[%s892_s7 + $0x3b] sm:$0x1]  ;;  %v272_v54 = vadd.f32 %v264_v47, %v256_v38  ;;  %v273_v55 = vadd.f32 %v265_v48, %v257_v39  ;;  %v276_v57 = vld [vmem:[%s892_s7 + $0x4] sm:$0x1] }
  0x4f   : > { %v274_v56 = vadd.f32 %v266_v49, %v258_v41  ;;  %v277_v58 = vld [vmem:[%s892_s7 + $0xc] sm:$0x1]  ;;  %v275_v59 = vadd.f32 %v267_v53, %v259_v42  ;;  %v278_v60 = vld [vmem:[%s892_s7 + $0x14] sm:$0x1]  ;;  %v279_v61 = vld [vmem:[%s892_s7 + $0x1c] sm:$0x1]  ;;  %v284_v63 = vadd.f32 %v276_v57, %v268_v46 }
  0x50   : > { %v280_v62 = vld [vmem:[%s892_s7 + $0x24] sm:$0x1]  ;;  %v285_v0 = vadd.f32 %v277_v58, %v269_v50  ;;  %v281_v1 = vld [vmem:[%s892_s7 + $0x2c] sm:$0x1]  ;;  %v282_v2 = vld [vmem:[%s892_s7 + $0x34] sm:$0x1]  ;;  %v286_v4 = vadd.f32 %v278_v60, %v270_v51  ;;  %v287_v5 = vadd.f32 %v279_v61, %v271_v52 }
  0x51   : > { %v283_v3 = vld [vmem:[%s892_s7 + $0x3c] sm:$0x1]  ;;  %v288_v6 = vadd.f32 %v280_v62, %v272_v54  ;;  %v289_v7 = vadd.f32 %v281_v1, %v273_v55  ;;  %v290_v8 = vadd.f32 %v282_v2, %v274_v56  ;;  %v292_v10 = vld [vmem:[%s892_s7 + $0x5] sm:$0x1]  ;;  %v293_v11 = vld [vmem:[%s892_s7 + $0xd] sm:$0x1] }
  0x52   : > { %v291_v9 = vadd.f32 %v283_v3, %v275_v59  ;;  %v294_v12 = vld [vmem:[%s892_s7 + $0x15] sm:$0x1]  ;;  %v295_v13 = vld [vmem:[%s892_s7 + $0x1d] sm:$0x1]  ;;  %v296_v14 = vld [vmem:[%s892_s7 + $0x25] sm:$0x1]  ;;  %v300_v16 = vadd.f32 %v292_v10, %v284_v63  ;;  %v301_v17 = vadd.f32 %v293_v11, %v285_v0 }
  0x53   : > { %v297_v15 = vld [vmem:[%s892_s7 + $0x2d] sm:$0x1]  ;;  %v302_v18 = vadd.f32 %v294_v12, %v286_v4  ;;  %v298_v19 = vld [vmem:[%s892_s7 + $0x35] sm:$0x1]  ;;  %v299_v20 = vld [vmem:[%s892_s7 + $0x3d] sm:$0x1]  ;;  %v303_v21 = vadd.f32 %v295_v13, %v287_v5  ;;  %v304_v22 = vadd.f32 %v296_v14, %v288_v6 }
  0x54   : > { %v305_v23 = vadd.f32 %v297_v15, %v289_v7  ;;  %v306_v24 = vadd.f32 %v298_v19, %v290_v8  ;;  %v307_v25 = vadd.f32 %v299_v20, %v291_v9  ;;  %v308_v26 = vmul.f32 0.16666667, %v300_v16  ;;  %s601_s8 = sshll.u32 %s806_s16, 3  ;;  %s597_s9 = sshll.u32 %s888_s26, 3 }
  0x55   : > { %v309_v27 = vmul.f32 0.16666667, %v301_v17  ;;  %v310_v28 = vmul.f32 0.16666667, %v302_v18  ;;  %v311_v29 = vmul.f32 0.16666667, %v303_v21  ;;  %s498_s29 = scalar_lea.hbm %s1012_s3, %s601_s8 }
  0x56   : > { %v312_v30 = vmul.f32 0.16666667, %v304_v22  ;;  %v313_v31 = vmul.f32 0.16666667, %v305_v23  ;;  %v314_v32 = vmul.f32 0.16666667, %v306_v24  ;;  %v404_v34 = vmul.f32 %v308_v26, %v308_v26 }
  0x57   : > { %v315_v33 = vmul.f32 0.16666667, %v307_v25  ;;  %v405_v35 = vmul.f32 %v309_v27, %v309_v27  ;;  %v406_v36 = vmul.f32 %v310_v28, %v310_v28  ;;  %v407_v37 = vmul.f32 %v311_v29, %v311_v29  ;;  %s210_s25 = scalar_lea.vmem [#allocation5], %s597_s9  ;;  %s502_s30 = sshll.u32 %s498_s29, 4  ;;  %s503_s30 = int_to_ptr.hbm [resolvable:$true] %s502_s30 }
  0x58   : > { %v408_v38 = vmul.f32 %v312_v30, %v312_v30  ;;  %v409_v39 = vmul.f32 %v313_v31, %v313_v31  ;;  %v410_v40 = vmul.f32 %v314_v32, %v314_v32  ;;  %vm388_vm5 = vcmask 1044484   ;;  %s500_s27 = sshll.u32 %s210_s25, 4  ;;  %s488_s7 = scalar_lea.sflag [#allocation4], %s888_s26  ;;  %s501_s27 = int_to_ptr.vmem [resolvable:$true] %s500_s27 }
  0x59   : > { %v411_v41 = vmul.f32 %v315_v33, %v315_v33  ;;  %v420_v42 = vrot.slane %v405_v35, 7  ;;  %v422_v43 = vrot.slane %v406_v36, 6  ;;  %v424_v44 = vrot.slane %v407_v37, 5  ;;  %s708_s28 = sshra.s32 %s503_s30, 4  ;;  %s714_s19 = scalar_lea.hbm %s1012_s3, 16  ;;  %s709_s28 = int_to_ptr.hbm [resolvable:$true] %s708_s28 }
  0x5a   : > { %v426_v45 = vrot.slane %v408_v38, 4  ;;  %v428_v47 = vrot.slane %v409_v39, 3  ;;  %vm391_vm6 = vcmask 1045509   ;;  %v430_v49 = vrot.slane %v410_v40, 2  ;;  %s710_s5 = scalar_lea.hbm %s709_s28, 8  ;;  %p715_p7 = scmp.lt.s32.totalorder %s709_s28, %s1012_s3 }
  0x5b   : > { %v421_v46 = vsel %vm379_vm2, %v420_v42, %v404_v34  ;;  %vm394_vm7 = vcmask 1046534   ;;  %v432_v51 = vrot.slane %v411_v41, 1  ;;  %vm397_vm8 = vcmask 1047559   ;;  %p711_p6 = scmp.ne.s32.totalorder %s709_s28, %s710_s5  ;;  %p716_p8 = scmp.lt.s32.totalorder %s714_s19, %s710_s5 }
  0x5c   : > { %v423_v48 = vsel %vm382_vm3, %v422_v43, %v421_v46  ;;  %vm400_vm9 = vcmask 261120   ;;  %v467_v37 = vlaneseq  ;;  %v469_v42 = vstv %s601_s8 }
  0x5d   : > { %v425_v50 = vsel %vm385_vm4, %v424_v44, %v423_v48  ;;  %vm474_vm1 = vcmask 7168   ;;  %p712_p13 = pnand %p711_p6, %p829_p9  ;;  %p717_p12 = por %p716_p8, %p715_p7 }
  0x5e   : > { %v427_v52 = vsel %vm388_vm5, %v426_v45, %v425_v50  ;;  %v468_v41 = vshrl.u32 %v467_v37, 7 }
  0x5f   : > { %v429_v53 = vsel %vm391_vm6, %v428_v47, %v427_v52  ;;  %p713_p5 = pneg %p712_p13 }
  0x60   : > { %v431_v54 = vsel %vm394_vm7, %v430_v49, %v429_v53  ;;  %v470_v47 = vadd.s32 %v469_v42, %v468_v41 }
  0x61   : > { %v433_v55 = vsel %vm397_vm8, %v432_v51, %v431_v54  ;;  %p718_p0 = pnand %p717_p12, %p713_p5 }
  0x62   : > { %v435_v56 = vsel %vm400_vm9, %v433_v55, 0.0  ;;  %vm471_vm0 = vcmp.lt.s32.totalorder %v470_v47, 10 }
  0x63   : > { %436 = vadd.xlane.f32.xlu0 %v435_v56 }
  0xc6   : > { %v343_v57 = vpop.f32.mrf.mxu0 }
  0xc7   : > { %v347_v58 = vrot.slane %v343_v57, 1  ;;  %v438_v59 = vmul.f32 %v343_v57, %v343_v57  ;;  %v348_v60 = vrot.slane %v343_v57, 2  ;;  %v349_v61 = vrot.slane %v343_v57, 3 }
  0xc8   : > { %v350_v62 = vrot.slane %v343_v57, 4  ;;  %v351_v63 = vrot.slane %v343_v57, 5  ;;  %v352_v0 = vrot.slane %v343_v57, 6  ;;  %v353_v2 = vrot.slane %v343_v57, 7 }
  0xc9   : > { %v439_v1 = vsel %vm400_vm9, %v438_v59, 0.0  ;;  %v363_v3 = vmul.f32 %v347_v58, %v309_v27  ;;  %v364_v4 = vmul.f32 %v348_v60, %v310_v28  ;;  %v365_v5 = vmul.f32 %v349_v61, %v311_v29 }
  0xca   : > { %440 = vadd.xlane.f32.xlu0 %v439_v1  ;;  %v366_v6 = vmul.f32 %v350_v62, %v312_v30  ;;  %v362_v7 = vmul.f32 %v343_v57, %v308_v26  ;;  %v367_v8 = vmul.f32 %v351_v63, %v313_v31  ;;  %v368_v11 = vmul.f32 %v352_v0, %v314_v32 }
  0xcb   : > { %v378_v9 = vrot.slane %v363_v3, 7  ;;  %v381_v10 = vrot.slane %v364_v4, 6  ;;  %v369_v12 = vmul.f32 %v353_v2, %v315_v33  ;;  %v384_v14 = vrot.slane %v365_v5, 5 }
  0xcc   : > { %v387_v16 = vrot.slane %v366_v6, 4  ;;  %v390_v18 = vrot.slane %v367_v8, 3  ;;  %v393_v20 = vrot.slane %v368_v11, 2 }
  0xcd   : > { %v380_v13 = vsel %vm379_vm2, %v378_v9, %v362_v7  ;;  %v396_v22 = vrot.slane %v369_v12, 1 }
  0xce   : > { %v383_v15 = vsel %vm382_vm3, %v381_v10, %v380_v13 }
  0xcf   : > { %v386_v17 = vsel %vm385_vm4, %v384_v14, %v383_v15 }
  0xd0   : > { %v389_v19 = vsel %vm388_vm5, %v387_v16, %v386_v17 }
  0xd1   : > { %v392_v21 = vsel %vm391_vm6, %v390_v18, %v389_v19 }
  0xd2   : > { %v395_v23 = vsel %vm394_vm7, %v393_v20, %v392_v21 }
  0xd3   : > { %v398_v24 = vsel %vm397_vm8, %v396_v22, %v395_v23 }
  0xd4   : > { %v401_v25 = vsel %vm400_vm9, %v398_v24, 0.0 }
  0xd5   : > { %402 = vadd.xlane.f32.xlu1 %v401_v25 }
  0xd6   : > { %v437_v26 = vpop.xlane.xlu0 %436 }
  0xd7   : > { %v442_v27 = vmax.f32 %v437_v26, 1e-24 }
  0xd9   : > { %651 = vrsqrt.f32 %v442_v27  ;;  %vm449_vm10 = vweird.f32 %v442_v27 }
  0xdf   : > { %v652_v28 = vpop.eup %651 }
  0xe0   : > { %v444_v29 = vmul.f32 %v652_v28, %v442_v27  ;;  %vm450_vm11 = vweird.f32 %v652_v28 }
  0xe1   : > { %vm451_vm12 = vmor %vm449_vm10, %vm450_vm11 }
  0xe2   : > { %v445_v32 = vmul.f32 %v652_v28, %v444_v29 }
  0xe4   : > { %v446_v33 = vmul.f32 0.5, %v445_v32 }
  0xe6   : > { %v447_v36 = vsub.f32 1.5, %v446_v33 }
  0xe8   : > { %v448_v40 = vmul.f32 %v652_v28, %v447_v36 }
  0xea   : > { %v452_v45 = vsel %vm451_vm12, %v652_v28, %v448_v40 }
 0x13d   : > { %v441_v30 = vpop.xlane.xlu0 %440 }
 0x13e   : > { %v453_v31 = vmax.f32 %v441_v30, 1e-24 }
 0x140   : > { %653 = vrsqrt.f32 %v453_v31  ;;  %vm460_vm14 = vweird.f32 %v453_v31 }
 0x146   : > { %v654_v34 = vpop.eup %653 }
 0x147   : > { %v455_v35 = vmul.f32 %v654_v34, %v453_v31  ;;  %vm461_vm13 = vweird.f32 %v654_v34 }
 0x148   : > { %v403_v44 = vpop.xlane.xlu1 %402  ;;  %vm462_vm15 = vmor %vm460_vm14, %vm461_vm13 }
 0x149   : > { %v456_v38 = vmul.f32 %v654_v34, %v455_v35  ;;  %v464_v48 = vmul.f32 %v452_v45, %v403_v44 }
 0x14b   : > { %v457_v39 = vmul.f32 0.5, %v456_v38 }
 0x14d   : > { %v458_v43 = vsub.f32 1.5, %v457_v39 }
 0x14f   : > { %v459_v46 = vmul.f32 %v654_v34, %v458_v43 }
 0x151   : > { %v463_v49 = vsel %vm462_vm15, %v654_v34, %v459_v46 }
 0x152   : > { %v465_v50 = vmul.f32 %v464_v48, %v463_v49 }
 0x154   : > { %v472_v51 = vsub.f32 1.0, %v465_v50 }
 0x156   : > { %v473_v52 = vsel %vm471_vm0, %v472_v51, 0.0 }
 0x157   : > { %v475_v53 = vsel %vm474_vm1, %v473_v52, 0.0 }
 0x158   : > { %476 = vadd.xlane.f32.xlu1 %v475_v53 }
 0x1cb   : > { %v477_v54 = vpop.xlane.xlu1 %476 }
 0x1cc   : > { %v478_v55 = vrot.slane %v477_v54, 4 }
 0x1ce   : > { %v479_v56 = vadd.f32 %v478_v55, %v477_v54 }
 0x1d0   : > { %v480_v57 = vrot.slane %v479_v56, 2 }
 0x1d2   : > { %v481_v58 = vadd.f32 %v480_v57, %v479_v56 }
 0x1d4   : > { %v482_v59 = vrot.slane %v481_v58, 1 }
 0x1d6   : > { %v483_v60 = vadd.f32 %v482_v59, %v481_v58 }
 0x1d8   : > { %607 = vpush %v483_v60 }
 0x209   : > { %s608_s4 = spop %607 }
 0x20a   : > { %v485_v61 = vstv %s608_s4 }
 0x20b   : > { %486 = vst [vmem:[%s210_s25] sm:$0xff] %v485_v61 }
 0x20c   : > { %721 = shalt.err (!%p718_p0)
}
 0x20d   : > { %610 = dma.vmem_to_hbm [thread:$0]  (%p829_p9), %s501_s27, 128, %s503_s30, %s488_s7  }
 0x20e PF: > { %s514_s26 = sand.u32 1, %s748_s12   ;;  %p1018_p1 = scmp.ge.s32.totalorder %s760_s15, 2 }
 0x20f   : > { %s515_s6 = scalar_lea.sflag [#allocation4], %s514_s26 }
 0x210   : > { %p613_p2 = pnand %p1018_p1, %p833_p10 }
 0x212   : > { %p614_p3 = pneg %p613_p2 }
 0x214   : > { %743 = dma.done.wait (%p614_p3), %s515_s6, 128  }
 0x215   : > { %745 = vsyncadd (%p614_p3), %s515_s6, 4294967168  ;;  %p16_p4 = scmp.ge.s32.totalorder %s810_s18, 4   ;;  %s1019_s12 = smov %s752_s13 }
 0x216   : > { %s1020_s13 = smov %s756_s14  ;;  %s1021_s14 = smov %s822_s21 }
 0x217   : > { %s1022_s15 = smov %s810_s18  ;;  %18 = sbr.rel (!%p16_p4) target bundleno = 5 (0x5), region = 80 }
 0x21c   :  { %521 = vsyncpa [#allocation3], 1 }
 0x21d   :  { %523 = vsyncpa [#allocation3 + $0x1], 1 }
 0x21e   :  { %524 = vsyncpa [#allocation4], 1 }
 0x21f   :  { %526 = vsyncpa [#allocation4 + $0x1], 1 }

</bundles_post_ra>
